<compile_context>
chip_gen: v6e
topology: v6e:2x2x1
jax: 0.10.0
libtpu: 0.0.40
codegen_flags: <defaults>
</compile_context>

<pallas_src>
import functools
import math

import jax
import jax.numpy as jnp
from jax.experimental import pallas as pl
from jax.experimental.pallas import tpu as pltpu


def news_encoder_kernel(x_ref, wqkv_ref, bqkv_ref, gamma_ref, beta_ref,
                        wa_ref, ba_ref, qv_ref, out_ref, *, num_heads, eps=1e-5):
    Bt, S, Dw = x_ref.shape
    Dm = gamma_ref.shape[-1]
    dk = Dm // num_heads
    mm_dtype = wqkv_ref.dtype            # bf16 on v6e/v7x if requested; f32 default

    # ---- fused Q/K/V projection over the whole (Bt*S) row block ------------
    x2 = x_ref[...].reshape(Bt * S, Dw)
    qkv = jnp.dot(x2.astype(mm_dtype), wqkv_ref[...],
                  preferred_element_type=jnp.float32) + bqkv_ref[...]
    q = qkv[:, 0 * Dm:1 * Dm].reshape(Bt, S, Dm)   # 1/sqrt(dk) already in Wq/bq
    k = qkv[:, 1 * Dm:2 * Dm].reshape(Bt, S, Dm)
    v = qkv[:, 2 * Dm:3 * Dm].reshape(Bt, S, Dm)

    # ---- per-head scaled dot-product attention (values only, no scratch) ---
    heads = []
    for h in range(num_heads):                     # static unroll, H is small
        sl = slice(h * dk, (h + 1) * dk)
        qh, kh, vh = q[:, :, sl], k[:, :, sl], v[:, :, sl]
        sc = jnp.einsum('bsd,btd->bst', qh, kh,
                        preferred_element_type=jnp.float32)
        sc = sc - jnp.max(sc, axis=-1, keepdims=True)
        p = jnp.exp(sc)
        attn = p / jnp.sum(p, axis=-1, keepdims=True)
        heads.append(jnp.einsum('bst,btd->bsd', attn, vh,
                                preferred_element_type=jnp.float32))
    o = jnp.concatenate(heads, axis=-1)            # (Bt, S, Dm), stays in vregs

    # ---- dropout (eval) = identity; LayerNorm (f32) -------------------------
    mean = jnp.mean(o, axis=-1, keepdims=True)
    var = jnp.mean((o - mean) ** 2, axis=-1, keepdims=True)
    y = (o - mean) * jax.lax.rsqrt(var + eps) * gamma_ref[...] + beta_ref[...]

    # ---- additive word attention --------------------------------------------
    y2 = y.reshape(Bt * S, Dm)
    t = jnp.tanh(jnp.dot(y2.astype(mm_dtype), wa_ref[...],
                         preferred_element_type=jnp.float32) + ba_ref[...])
    s = jnp.dot(t.astype(mm_dtype), qv_ref[...],
                preferred_element_type=jnp.float32).reshape(Bt, S, 1)
    s = s - jnp.max(s, axis=1, keepdims=True)
    w = jnp.exp(s)
    w = w / jnp.sum(w, axis=1, keepdims=True)      # softmax over the seq axis
    news = jnp.sum(w * y, axis=1)                  # (Bt, Dm)

    out_ref[...] = news.astype(out_ref.dtype)      # lane-dense multi-row store


def news_encoder_forward(x, params, num_heads, *, block_b=None,
                         matmul_dtype=jnp.float32):
    B, S, Dw = x.shape
    Dm = params["wq"].shape[1]
    Dq = params["wa"].shape[1]
    dk = Dm // num_heads
    scale = 1.0 / math.sqrt(dk)

    # Fuse Q/K/V weights and fold 1/sqrt(dk) into the Q projection (host-side).
    wqkv = jnp.concatenate(
        [params["wq"] * scale, params["wk"], params["wv"]], axis=1
    ).astype(matmul_dtype)
    bqkv = jnp.concatenate(
        [params["bq"] * scale, params["bk"], params["bv"]], axis=1
    ).astype(jnp.float32)
    wa = params["wa"].astype(matmul_dtype)
    qv = params["qv"].astype(matmul_dtype)

    # Batch tile: target ~512 rows (Bt*S) per grid step; keep the output-store
    # row count 8-aligned whenever the grid has more than one step.
    if block_b is None:
        block_b = min(B, max(1, 512 // S))
        if block_b < B and block_b % 8 != 0:
            block_b = max(8, (block_b // 8) * 8)
    n_blocks = -(-B // block_b)
    Bp = n_blocks * block_b
    if Bp != B:
        x = jnp.pad(x, ((0, Bp - B), (0, 0), (0, 0)))  # zero rows are benign

    kernel = functools.partial(news_encoder_kernel, num_heads=num_heads)
    full2d = lambda b: (0, 0)

    flops = (2 * Bp * S * Dw * 3 * Dm                     # fused QKV projection
             + 4 * Bp * num_heads * S * S * dk            # scores + attn @ V
             + 2 * Bp * S * Dm * Dq + 2 * Bp * S * Dq)    # additive attention
    transcendentals = Bp * num_heads * S * S + Bp * S * (Dq + 2)
    bytes_accessed = 4 * (Bp * S * Dw + Dw * 3 * Dm + 3 * Dm + 2 * Dm
                          + Dm * Dq + 2 * Dq + Bp * Dm)

    out = pl.pallas_call(
        kernel,
        out_shape=jax.ShapeDtypeStruct((Bp, Dm), jnp.float32),
        grid_spec=pltpu.PrefetchScalarGridSpec(
            num_scalar_prefetch=0,
            grid=(n_blocks,),
            in_specs=[
                pl.BlockSpec((block_b, S, Dw), lambda b: (b, 0, 0)),  # x tile
                pl.BlockSpec((Dw, 3 * Dm), full2d),                   # fused Wqkv
                pl.BlockSpec((1, 3 * Dm), full2d),                    # fused bqkv
                pl.BlockSpec((1, Dm), full2d),                        # LN gamma
                pl.BlockSpec((1, Dm), full2d),                        # LN beta
                pl.BlockSpec((Dm, Dq), full2d),                       # additive Wa
                pl.BlockSpec((1, Dq), full2d),                        # additive ba
                pl.BlockSpec((Dq, 1), full2d),                        # query vector
            ],
            out_specs=pl.BlockSpec((block_b, Dm), lambda b: (b, 0)),
        ),
        compiler_params=pltpu.CompilerParams(
            dimension_semantics=("parallel",)),
        cost_estimate=pl.CostEstimate(flops=flops,
                                      transcendentals=transcendentals,
                                      bytes_accessed=bytes_accessed),
    )(x, wqkv, bqkv, params["gamma"], params["beta"], wa, params["ba"], qv)

    return out[:B]


def reference_forward(x, params, num_heads, eps=1e-5):
    """Pure-JAX reference of the same forward pass (for correctness check)."""
    B, S, Dw = x.shape
    Dm = params["wq"].shape[1]
    dk = Dm // num_heads
    Q = x @ params["wq"] + params["bq"]
    K = x @ params["wk"] + params["bk"]
    V = x @ params["wv"] + params["bv"]
    Qh = Q.reshape(B, S, num_heads, dk).transpose(0, 2, 1, 3)
    Kh = K.reshape(B, S, num_heads, dk).transpose(0, 2, 1, 3)
    Vh = V.reshape(B, S, num_heads, dk).transpose(0, 2, 1, 3)
    scores = jnp.einsum("bhsd,bhtd->bhst", Qh, Kh) / math.sqrt(dk)
    attn = jax.nn.softmax(scores, axis=-1)
    O = jnp.einsum("bhst,bhtd->bhsd", attn, Vh).transpose(0, 2, 1, 3).reshape(B, S, Dm)
    mean = O.mean(-1, keepdims=True)
    var = ((O - mean) ** 2).mean(-1, keepdims=True)
    Y = (O - mean) / jnp.sqrt(var + eps) * params["gamma"] + params["beta"]
    t = jnp.tanh(Y @ params["wa"] + params["ba"])
    s = (t @ params["qv"])[..., 0]
    w = jax.nn.softmax(s, axis=-1)
    return jnp.einsum("bs,bsd->bd", w, Y)


def init_params(key, word_dim, attention_dim, attention_heads, query_vector_dim):
    multi_dim = attention_dim * attention_heads
    ks = jax.random.split(key, 8)
    scale_in = 1.0 / math.sqrt(word_dim)
    scale_m = 1.0 / math.sqrt(multi_dim)
    return {
        "wq": jax.random.normal(ks[0], (word_dim, multi_dim), jnp.float32) * scale_in,
        "bq": jnp.zeros((1, multi_dim), jnp.float32),
        "wk": jax.random.normal(ks[1], (word_dim, multi_dim), jnp.float32) * scale_in,
        "bk": jnp.zeros((1, multi_dim), jnp.float32),
        "wv": jax.random.normal(ks[2], (word_dim, multi_dim), jnp.float32) * scale_in,
        "bv": jnp.zeros((1, multi_dim), jnp.float32),
        "gamma": jnp.ones((1, multi_dim), jnp.float32),
        "beta": jnp.zeros((1, multi_dim), jnp.float32),
        "wa": jax.random.normal(ks[3], (multi_dim, query_vector_dim), jnp.float32) * scale_m,
        "ba": jnp.zeros((1, query_vector_dim), jnp.float32),
        "qv": jax.random.normal(ks[4], (query_vector_dim, 1), jnp.float32),
    }


if __name__ == "__main__":
    # Small shapes consistent with the module's forward.
    batch = 2
    seq_len = 8
    word_dim = 32
    attention_dim = 16
    attention_heads = 4
    query_vector_dim = 32
    multi_dim = attention_dim * attention_heads   # 64

    key = jax.random.PRNGKey(0)
    k_x, k_p, k_x2 = jax.random.split(key, 3)
    word_embedding = jax.random.normal(k_x, (batch, seq_len, word_dim), jnp.float32)
    params = init_params(k_p, word_dim, attention_dim, attention_heads, query_vector_dim)

    news_rep = jax.block_until_ready(
        news_encoder_forward(word_embedding, params, attention_heads))
    ref = reference_forward(word_embedding, params, attention_heads)
    assert news_rep.shape == (batch, multi_dim)
    assert jnp.allclose(news_rep, ref, atol=1e-4, rtol=1e-4)

    # Exercise the batch-tiled multi-step grid path (padding + 2 grid steps).
    big_batch = 80
    x_big = jax.random.normal(k_x2, (big_batch, seq_len, word_dim), jnp.float32)
    big_rep = jax.block_until_ready(
        news_encoder_forward(x_big, params, attention_heads))
    big_ref = reference_forward(x_big, params, attention_heads)
    assert big_rep.shape == (big_batch, multi_dim)
    assert jnp.allclose(big_rep, big_ref, atol=1e-4, rtol=1e-4)

    print("KERNEL_OK")
</pallas_src>

<mosaic_0001>
module attributes {stable_mosaic.version = 11 : i64} {
  func.func @news_encoder_kernel(%arg0: i32, %arg1: memref<2x8x32xf32, #tpu.memory_space<vmem>>, %arg2: memref<32x192xf32, #tpu.memory_space<vmem>>, %arg3: memref<1x192xf32, #tpu.memory_space<vmem>>, %arg4: memref<1x64xf32, #tpu.memory_space<vmem>>, %arg5: memref<1x64xf32, #tpu.memory_space<vmem>>, %arg6: memref<64x32xf32, #tpu.memory_space<vmem>>, %arg7: memref<1x32xf32, #tpu.memory_space<vmem>>, %arg8: memref<32x1xf32, #tpu.memory_space<vmem>>, %arg9: memref<2x64xf32, #tpu.memory_space<vmem>>) attributes {dimension_semantics = [#tpu.dimension_semantics<parallel>], iteration_bounds = array<i64: 1>, scalar_prefetch = 0 : i64, scratch_operands = 0 : i64, tpu.core_type = #tpu.core_type<tc>, window_params = [{transform_indices = @transform_0, window_bounds = array<i64: 2, 8, 32>}, {pipeline_mode = #tpu.pipeline_mode<synchronous>, transform_indices = @transform_1, window_bounds = array<i64: 32, 192>}, {pipeline_mode = #tpu.pipeline_mode<synchronous>, transform_indices = @transform_2, window_bounds = array<i64: 1, 192>}, {pipeline_mode = #tpu.pipeline_mode<synchronous>, transform_indices = @transform_3, window_bounds = array<i64: 1, 64>}, {pipeline_mode = #tpu.pipeline_mode<synchronous>, transform_indices = @transform_4, window_bounds = array<i64: 1, 64>}, {pipeline_mode = #tpu.pipeline_mode<synchronous>, transform_indices = @transform_5, window_bounds = array<i64: 64, 32>}, {pipeline_mode = #tpu.pipeline_mode<synchronous>, transform_indices = @transform_6, window_bounds = array<i64: 1, 32>}, {pipeline_mode = #tpu.pipeline_mode<synchronous>, transform_indices = @transform_7, window_bounds = array<i64: 32, 1>}, {transform_indices = @transform_8, window_bounds = array<i64: 2, 64>}]} {
    %c0 = arith.constant 0 : index
    %c0_0 = arith.constant 0 : index
    %c0_1 = arith.constant 0 : index
    %0 = vector.load %arg1[%c0, %c0_0, %c0_1] : memref<2x8x32xf32, #tpu.memory_space<vmem>>, vector<2x8x32xf32>
    %1 = vector.shape_cast %0 : vector<2x8x32xf32> to vector<16x32xf32>
    %c0_2 = arith.constant 0 : index
    %c0_3 = arith.constant 0 : index
    %2 = vector.load %arg2[%c0_2, %c0_3] : memref<32x192xf32, #tpu.memory_space<vmem>>, vector<32x192xf32>
    %cst = arith.constant dense<0.000000e+00> : vector<16x192xf32>
    %3 = tpu.matmul %1, %2, %cst {dimension_numbers = #tpu.dot_dimension_numbers<[1], [0], [0], [1], [0, 0, 1, 1], [], []>} : vector<16x32xf32>, vector<32x192xf32>, vector<16x192xf32> -> vector<16x192xf32>
    %c0_4 = arith.constant 0 : index
    %c0_5 = arith.constant 0 : index
    %4 = vector.load %arg3[%c0_4, %c0_5] : memref<1x192xf32, #tpu.memory_space<vmem>>, vector<1x192xf32>
    %5 = vector.broadcast %4 : vector<1x192xf32> to vector<16x192xf32>
    %6 = arith.addf %3, %5 : vector<16x192xf32>
    %7 = vector.extract_strided_slice %6 {offsets = [0, 0], sizes = [16, 64], strides = [1, 1]} : vector<16x192xf32> to vector<16x64xf32>
    %8 = vector.shape_cast %7 : vector<16x64xf32> to vector<2x8x64xf32>
    %9 = vector.extract_strided_slice %6 {offsets = [0, 64], sizes = [16, 64], strides = [1, 1]} : vector<16x192xf32> to vector<16x64xf32>
    %10 = vector.shape_cast %9 : vector<16x64xf32> to vector<2x8x64xf32>
    %11 = vector.extract_strided_slice %6 {offsets = [0, 128], sizes = [16, 64], strides = [1, 1]} : vector<16x192xf32> to vector<16x64xf32>
    %12 = vector.shape_cast %11 : vector<16x64xf32> to vector<2x8x64xf32>
    %13 = vector.extract_strided_slice %8 {offsets = [0, 0, 0], sizes = [2, 8, 16], strides = [1, 1, 1]} : vector<2x8x64xf32> to vector<2x8x16xf32>
    %14 = vector.extract_strided_slice %10 {offsets = [0, 0, 0], sizes = [2, 8, 16], strides = [1, 1, 1]} : vector<2x8x64xf32> to vector<2x8x16xf32>
    %15 = vector.extract_strided_slice %12 {offsets = [0, 0, 0], sizes = [2, 8, 16], strides = [1, 1, 1]} : vector<2x8x64xf32> to vector<2x8x16xf32>
    "tpu.trace_start"() <{level = 10 : i32, message = "bsd,btd->bst"}> : () -> ()
    %cst_6 = arith.constant dense<0.000000e+00> : vector<2x8x8xf32>
    %16 = tpu.matmul %13, %14, %cst_6 {dimension_numbers = #tpu.dot_dimension_numbers<[2], [2], [1], [1], [0, 0, 0, 1, 1, 1], [0], [0]>} : vector<2x8x16xf32>, vector<2x8x16xf32>, vector<2x8x8xf32> -> vector<2x8x8xf32>
    "tpu.trace_stop"() : () -> ()
    %cst_7 = arith.constant dense<0xFF800000> : vector<2x8xf32>
    %17 = vector.multi_reduction <maximumf>, %16, %cst_7 [2] : vector<2x8x8xf32> to vector<2x8xf32>
    %18 = vector.shape_cast %17 : vector<2x8xf32> to vector<2x8x1xf32>
    %19 = vector.broadcast %18 : vector<2x8x1xf32> to vector<2x8x8xf32>
    %20 = arith.subf %16, %19 : vector<2x8x8xf32>
    %21 = math.exp %20 : vector<2x8x8xf32>
    %cst_8 = arith.constant dense<0.000000e+00> : vector<2x8xf32>
    %22 = vector.multi_reduction <add>, %21, %cst_8 [2] : vector<2x8x8xf32> to vector<2x8xf32>
    %23 = vector.shape_cast %22 : vector<2x8xf32> to vector<2x8x1xf32>
    %24 = vector.broadcast %23 : vector<2x8x1xf32> to vector<2x8x8xf32>
    %25 = arith.divf %21, %24 : vector<2x8x8xf32>
    "tpu.trace_start"() <{level = 10 : i32, message = "bst,btd->bsd"}> : () -> ()
    %cst_9 = arith.constant dense<0.000000e+00> : vector<2x8x16xf32>
    %26 = tpu.matmul %25, %15, %cst_9 {dimension_numbers = #tpu.dot_dimension_numbers<[2], [1], [1], [2], [0, 0, 0, 1, 1, 2], [0], [0]>} : vector<2x8x8xf32>, vector<2x8x16xf32>, vector<2x8x16xf32> -> vector<2x8x16xf32>
    "tpu.trace_stop"() : () -> ()
    %27 = vector.extract_strided_slice %8 {offsets = [0, 0, 16], sizes = [2, 8, 16], strides = [1, 1, 1]} : vector<2x8x64xf32> to vector<2x8x16xf32>
    %28 = vector.extract_strided_slice %10 {offsets = [0, 0, 16], sizes = [2, 8, 16], strides = [1, 1, 1]} : vector<2x8x64xf32> to vector<2x8x16xf32>
    %29 = vector.extract_strided_slice %12 {offsets = [0, 0, 16], sizes = [2, 8, 16], strides = [1, 1, 1]} : vector<2x8x64xf32> to vector<2x8x16xf32>
    "tpu.trace_start"() <{level = 10 : i32, message = "bsd,btd->bst"}> : () -> ()
    %cst_10 = arith.constant dense<0.000000e+00> : vector<2x8x8xf32>
    %30 = tpu.matmul %27, %28, %cst_10 {dimension_numbers = #tpu.dot_dimension_numbers<[2], [2], [1], [1], [0, 0, 0, 1, 1, 1], [0], [0]>} : vector<2x8x16xf32>, vector<2x8x16xf32>, vector<2x8x8xf32> -> vector<2x8x8xf32>
    "tpu.trace_stop"() : () -> ()
    %cst_11 = arith.constant dense<0xFF800000> : vector<2x8xf32>
    %31 = vector.multi_reduction <maximumf>, %30, %cst_11 [2] : vector<2x8x8xf32> to vector<2x8xf32>
    %32 = vector.shape_cast %31 : vector<2x8xf32> to vector<2x8x1xf32>
    %33 = vector.broadcast %32 : vector<2x8x1xf32> to vector<2x8x8xf32>
    %34 = arith.subf %30, %33 : vector<2x8x8xf32>
    %35 = math.exp %34 : vector<2x8x8xf32>
    %cst_12 = arith.constant dense<0.000000e+00> : vector<2x8xf32>
    %36 = vector.multi_reduction <add>, %35, %cst_12 [2] : vector<2x8x8xf32> to vector<2x8xf32>
    %37 = vector.shape_cast %36 : vector<2x8xf32> to vector<2x8x1xf32>
    %38 = vector.broadcast %37 : vector<2x8x1xf32> to vector<2x8x8xf32>
    %39 = arith.divf %35, %38 : vector<2x8x8xf32>
    "tpu.trace_start"() <{level = 10 : i32, message = "bst,btd->bsd"}> : () -> ()
    %cst_13 = arith.constant dense<0.000000e+00> : vector<2x8x16xf32>
    %40 = tpu.matmul %39, %29, %cst_13 {dimension_numbers = #tpu.dot_dimension_numbers<[2], [1], [1], [2], [0, 0, 0, 1, 1, 2], [0], [0]>} : vector<2x8x8xf32>, vector<2x8x16xf32>, vector<2x8x16xf32> -> vector<2x8x16xf32>
    "tpu.trace_stop"() : () -> ()
    %41 = vector.extract_strided_slice %8 {offsets = [0, 0, 32], sizes = [2, 8, 16], strides = [1, 1, 1]} : vector<2x8x64xf32> to vector<2x8x16xf32>
    %42 = vector.extract_strided_slice %10 {offsets = [0, 0, 32], sizes = [2, 8, 16], strides = [1, 1, 1]} : vector<2x8x64xf32> to vector<2x8x16xf32>
    %43 = vector.extract_strided_slice %12 {offsets = [0, 0, 32], sizes = [2, 8, 16], strides = [1, 1, 1]} : vector<2x8x64xf32> to vector<2x8x16xf32>
    "tpu.trace_start"() <{level = 10 : i32, message = "bsd,btd->bst"}> : () -> ()
    %cst_14 = arith.constant dense<0.000000e+00> : vector<2x8x8xf32>
    %44 = tpu.matmul %41, %42, %cst_14 {dimension_numbers = #tpu.dot_dimension_numbers<[2], [2], [1], [1], [0, 0, 0, 1, 1, 1], [0], [0]>} : vector<2x8x16xf32>, vector<2x8x16xf32>, vector<2x8x8xf32> -> vector<2x8x8xf32>
    "tpu.trace_stop"() : () -> ()
    %cst_15 = arith.constant dense<0xFF800000> : vector<2x8xf32>
    %45 = vector.multi_reduction <maximumf>, %44, %cst_15 [2] : vector<2x8x8xf32> to vector<2x8xf32>
    %46 = vector.shape_cast %45 : vector<2x8xf32> to vector<2x8x1xf32>
    %47 = vector.broadcast %46 : vector<2x8x1xf32> to vector<2x8x8xf32>
    %48 = arith.subf %44, %47 : vector<2x8x8xf32>
    %49 = math.exp %48 : vector<2x8x8xf32>
    %cst_16 = arith.constant dense<0.000000e+00> : vector<2x8xf32>
    %50 = vector.multi_reduction <add>, %49, %cst_16 [2] : vector<2x8x8xf32> to vector<2x8xf32>
    %51 = vector.shape_cast %50 : vector<2x8xf32> to vector<2x8x1xf32>
    %52 = vector.broadcast %51 : vector<2x8x1xf32> to vector<2x8x8xf32>
    %53 = arith.divf %49, %52 : vector<2x8x8xf32>
    "tpu.trace_start"() <{level = 10 : i32, message = "bst,btd->bsd"}> : () -> ()
    %cst_17 = arith.constant dense<0.000000e+00> : vector<2x8x16xf32>
    %54 = tpu.matmul %53, %43, %cst_17 {dimension_numbers = #tpu.dot_dimension_numbers<[2], [1], [1], [2], [0, 0, 0, 1, 1, 2], [0], [0]>} : vector<2x8x8xf32>, vector<2x8x16xf32>, vector<2x8x16xf32> -> vector<2x8x16xf32>
    "tpu.trace_stop"() : () -> ()
    %55 = vector.extract_strided_slice %8 {offsets = [0, 0, 48], sizes = [2, 8, 16], strides = [1, 1, 1]} : vector<2x8x64xf32> to vector<2x8x16xf32>
    %56 = vector.extract_strided_slice %10 {offsets = [0, 0, 48], sizes = [2, 8, 16], strides = [1, 1, 1]} : vector<2x8x64xf32> to vector<2x8x16xf32>
    %57 = vector.extract_strided_slice %12 {offsets = [0, 0, 48], sizes = [2, 8, 16], strides = [1, 1, 1]} : vector<2x8x64xf32> to vector<2x8x16xf32>
    "tpu.trace_start"() <{level = 10 : i32, message = "bsd,btd->bst"}> : () -> ()
    %cst_18 = arith.constant dense<0.000000e+00> : vector<2x8x8xf32>
    %58 = tpu.matmul %55, %56, %cst_18 {dimension_numbers = #tpu.dot_dimension_numbers<[2], [2], [1], [1], [0, 0, 0, 1, 1, 1], [0], [0]>} : vector<2x8x16xf32>, vector<2x8x16xf32>, vector<2x8x8xf32> -> vector<2x8x8xf32>
    "tpu.trace_stop"() : () -> ()
    %cst_19 = arith.constant dense<0xFF800000> : vector<2x8xf32>
    %59 = vector.multi_reduction <maximumf>, %58, %cst_19 [2] : vector<2x8x8xf32> to vector<2x8xf32>
    %60 = vector.shape_cast %59 : vector<2x8xf32> to vector<2x8x1xf32>
    %61 = vector.broadcast %60 : vector<2x8x1xf32> to vector<2x8x8xf32>
    %62 = arith.subf %58, %61 : vector<2x8x8xf32>
    %63 = math.exp %62 : vector<2x8x8xf32>
    %cst_20 = arith.constant dense<0.000000e+00> : vector<2x8xf32>
    %64 = vector.multi_reduction <add>, %63, %cst_20 [2] : vector<2x8x8xf32> to vector<2x8xf32>
    %65 = vector.shape_cast %64 : vector<2x8xf32> to vector<2x8x1xf32>
    %66 = vector.broadcast %65 : vector<2x8x1xf32> to vector<2x8x8xf32>
    %67 = arith.divf %63, %66 : vector<2x8x8xf32>
    "tpu.trace_start"() <{level = 10 : i32, message = "bst,btd->bsd"}> : () -> ()
    %cst_21 = arith.constant dense<0.000000e+00> : vector<2x8x16xf32>
    %68 = tpu.matmul %67, %57, %cst_21 {dimension_numbers = #tpu.dot_dimension_numbers<[2], [1], [1], [2], [0, 0, 0, 1, 1, 2], [0], [0]>} : vector<2x8x8xf32>, vector<2x8x16xf32>, vector<2x8x16xf32> -> vector<2x8x16xf32>
    "tpu.trace_stop"() : () -> ()
    %69 = tpu.concatenate %26, %40, %54, %68 in 2 : vector<2x8x16xf32>, vector<2x8x16xf32>, vector<2x8x16xf32>, vector<2x8x16xf32> -> vector<2x8x64xf32>
    %cst_22 = arith.constant dense<0.000000e+00> : vector<2x8xf32>
    %70 = vector.multi_reduction <add>, %69, %cst_22 [2] : vector<2x8x64xf32> to vector<2x8xf32>
    %71 = vector.shape_cast %70 : vector<2x8xf32> to vector<2x8x1xf32>
    %cst_23 = arith.constant 6.400000e+01 : f32
    %72 = vector.broadcast %cst_23 : f32 to vector<2x8x1xf32>
    %73 = arith.divf %71, %72 : vector<2x8x1xf32>
    %74 = vector.broadcast %73 : vector<2x8x1xf32> to vector<2x8x64xf32>
    %75 = arith.subf %69, %74 : vector<2x8x64xf32>
    %76 = arith.mulf %75, %75 : vector<2x8x64xf32>
    %cst_24 = arith.constant dense<0.000000e+00> : vector<2x8xf32>
    %77 = vector.multi_reduction <add>, %76, %cst_24 [2] : vector<2x8x64xf32> to vector<2x8xf32>
    %78 = vector.shape_cast %77 : vector<2x8xf32> to vector<2x8x1xf32>
    %cst_25 = arith.constant 6.400000e+01 : f32
    %79 = vector.broadcast %cst_25 : f32 to vector<2x8x1xf32>
    %80 = arith.divf %78, %79 : vector<2x8x1xf32>
    %81 = vector.broadcast %73 : vector<2x8x1xf32> to vector<2x8x64xf32>
    %82 = arith.subf %69, %81 : vector<2x8x64xf32>
    %cst_26 = arith.constant 9.99999974E-6 : f32
    %83 = vector.broadcast %cst_26 : f32 to vector<2x8x1xf32>
    %84 = arith.addf %80, %83 : vector<2x8x1xf32>
    %85 = math.rsqrt %84 : vector<2x8x1xf32>
    %86 = vector.broadcast %85 : vector<2x8x1xf32> to vector<2x8x64xf32>
    %87 = arith.mulf %82, %86 : vector<2x8x64xf32>
    %c0_27 = arith.constant 0 : index
    %c0_28 = arith.constant 0 : index
    %88 = vector.load %arg4[%c0_27, %c0_28] : memref<1x64xf32, #tpu.memory_space<vmem>>, vector<1x64xf32>
    %89 = vector.shape_cast %88 : vector<1x64xf32> to vector<1x1x64xf32>
    %90 = vector.broadcast %89 : vector<1x1x64xf32> to vector<2x8x64xf32>
    %91 = arith.mulf %87, %90 : vector<2x8x64xf32>
    %c0_29 = arith.constant 0 : index
    %c0_30 = arith.constant 0 : index
    %92 = vector.load %arg5[%c0_29, %c0_30] : memref<1x64xf32, #tpu.memory_space<vmem>>, vector<1x64xf32>
    %93 = vector.shape_cast %92 : vector<1x64xf32> to vector<1x1x64xf32>
    %94 = vector.broadcast %93 : vector<1x1x64xf32> to vector<2x8x64xf32>
    %95 = arith.addf %91, %94 : vector<2x8x64xf32>
    %96 = vector.shape_cast %95 : vector<2x8x64xf32> to vector<16x64xf32>
    %c0_31 = arith.constant 0 : index
    %c0_32 = arith.constant 0 : index
    %97 = vector.load %arg6[%c0_31, %c0_32] : memref<64x32xf32, #tpu.memory_space<vmem>>, vector<64x32xf32>
    %cst_33 = arith.constant dense<0.000000e+00> : vector<16x32xf32>
    %98 = tpu.matmul %96, %97, %cst_33 {dimension_numbers = #tpu.dot_dimension_numbers<[1], [0], [0], [1], [0, 0, 1, 1], [], []>} : vector<16x64xf32>, vector<64x32xf32>, vector<16x32xf32> -> vector<16x32xf32>
    %c0_34 = arith.constant 0 : index
    %c0_35 = arith.constant 0 : index
    %99 = vector.load %arg7[%c0_34, %c0_35] : memref<1x32xf32, #tpu.memory_space<vmem>>, vector<1x32xf32>
    %100 = vector.broadcast %99 : vector<1x32xf32> to vector<16x32xf32>
    %101 = arith.addf %98, %100 : vector<16x32xf32>
    %102 = math.tanh %101 : vector<16x32xf32>
    %c0_36 = arith.constant 0 : index
    %c0_37 = arith.constant 0 : index
    %103 = vector.load %arg8[%c0_36, %c0_37] : memref<32x1xf32, #tpu.memory_space<vmem>>, vector<32x1xf32>
    %cst_38 = arith.constant dense<0.000000e+00> : vector<16x1xf32>
    %104 = tpu.matmul %102, %103, %cst_38 {dimension_numbers = #tpu.dot_dimension_numbers<[1], [0], [0], [1], [0, 0, 1, 1], [], []>} : vector<16x32xf32>, vector<32x1xf32>, vector<16x1xf32> -> vector<16x1xf32>
    %105 = vector.shape_cast %104 : vector<16x1xf32> to vector<2x8x1xf32>
    %cst_39 = arith.constant dense<0xFF800000> : vector<2x1xf32>
    %106 = vector.multi_reduction <maximumf>, %105, %cst_39 [1] : vector<2x8x1xf32> to vector<2x1xf32>
    %107 = vector.shape_cast %106 : vector<2x1xf32> to vector<2x1x1xf32>
    %108 = vector.broadcast %107 : vector<2x1x1xf32> to vector<2x8x1xf32>
    %109 = arith.subf %105, %108 : vector<2x8x1xf32>
    %110 = math.exp %109 : vector<2x8x1xf32>
    %cst_40 = arith.constant dense<0.000000e+00> : vector<2x1xf32>
    %111 = vector.multi_reduction <add>, %110, %cst_40 [1] : vector<2x8x1xf32> to vector<2x1xf32>
    %112 = vector.shape_cast %111 : vector<2x1xf32> to vector<2x1x1xf32>
    %113 = vector.broadcast %112 : vector<2x1x1xf32> to vector<2x8x1xf32>
    %114 = arith.divf %110, %113 : vector<2x8x1xf32>
    %115 = vector.broadcast %114 : vector<2x8x1xf32> to vector<2x8x64xf32>
    %116 = arith.mulf %115, %95 : vector<2x8x64xf32>
    %cst_41 = arith.constant dense<0.000000e+00> : vector<2x64xf32>
    %117 = vector.multi_reduction <add>, %116, %cst_41 [1] : vector<2x8x64xf32> to vector<2x64xf32>
    %c0_42 = arith.constant 0 : index
    %c0_43 = arith.constant 0 : index
    %118 = vector.load %arg9[%c0_42, %c0_43] : memref<2x64xf32, #tpu.memory_space<vmem>>, vector<2x64xf32>
    tpu.vector_store %arg9[%c0_42, %c0_43], %117 {strides = array<i32>} : memref<2x64xf32, #tpu.memory_space<vmem>>, vector<2x64xf32>,
    return
  }
  func.func @transform_0(%arg0: i32) -> (i32, i32, i32) {
    %c0_i32 = arith.constant 0 : i32
    %c0_i32_0 = arith.constant 0 : i32
    %c0_i32_1 = arith.constant 0 : i32
    return %arg0, %c0_i32, %c0_i32_0 : i32, i32, i32
  }
  func.func @transform_1(%arg0: i32) -> (i32, i32) {
    %c0_i32 = arith.constant 0 : i32
    %c0_i32_0 = arith.constant 0 : i32
    %c0_i32_1 = arith.constant 0 : i32
    return %c0_i32, %c0_i32_0 : i32, i32
  }
  func.func @transform_2(%arg0: i32) -> (i32, i32) {
    %c0_i32 = arith.constant 0 : i32
    %c0_i32_0 = arith.constant 0 : i32
    %c0_i32_1 = arith.constant 0 : i32
    return %c0_i32, %c0_i32_0 : i32, i32
  }
  func.func @transform_3(%arg0: i32) -> (i32, i32) {
    %c0_i32 = arith.constant 0 : i32
    %c0_i32_0 = arith.constant 0 : i32
    %c0_i32_1 = arith.constant 0 : i32
    return %c0_i32, %c0_i32_0 : i32, i32
  }
  func.func @transform_4(%arg0: i32) -> (i32, i32) {
    %c0_i32 = arith.constant 0 : i32
    %c0_i32_0 = arith.constant 0 : i32
    %c0_i32_1 = arith.constant 0 : i32
    return %c0_i32, %c0_i32_0 : i32, i32
  }
  func.func @transform_5(%arg0: i32) -> (i32, i32) {
    %c0_i32 = arith.constant 0 : i32
    %c0_i32_0 = arith.constant 0 : i32
    %c0_i32_1 = arith.constant 0 : i32
    return %c0_i32, %c0_i32_0 : i32, i32
  }
  func.func @transform_6(%arg0: i32) -> (i32, i32) {
    %c0_i32 = arith.constant 0 : i32
    %c0_i32_0 = arith.constant 0 : i32
    %c0_i32_1 = arith.constant 0 : i32
    return %c0_i32, %c0_i32_0 : i32, i32
  }
  func.func @transform_7(%arg0: i32) -> (i32, i32) {
    %c0_i32 = arith.constant 0 : i32
    %c0_i32_0 = arith.constant 0 : i32
    %c0_i32_1 = arith.constant 0 : i32
    return %c0_i32, %c0_i32_0 : i32, i32
  }
  func.func @transform_8(%arg0: i32) -> (i32, i32) {
    %c0_i32 = arith.constant 0 : i32
    %c0_i32_0 = arith.constant 0 : i32
    return %arg0, %c0_i32 : i32, i32
  }
}

</mosaic_0001>

<bundles_post_ra>
// kernel: tpu_custom_call.1
= control target key start
LH: loop header
LB: loop body
LE: loop exit
PB: predicated region body
PF: predicated region fallthrough
CT: control target
= control target key end

     0   :  { %v2072_v4 = vmov 0.0   ;;  %s2395_s0 = inlined_call_operand.vmem [shape: f32[2,8,32], index: 0, kind: input, shape index: {}]   ;;  %s2396_s1 = inlined_call_operand.vmem [shape: f32[32,192], index: 1, kind: input, shape index: {}]   ;;  %s2397_s2 = inlined_call_operand.vmem [shape: f32[1,192], index: 2, kind: input, shape index: {}]   ;;  %s2398_s3 = inlined_call_operand.vmem [shape: f32[1,64], index: 3, kind: input, shape index: {}]   ;;  %s2399_s4 = inlined_call_operand.vmem [shape: f32[1,64], index: 4, kind: input, shape index: {}]   ;;  %s2400_s5 = inlined_call_operand.vmem [shape: f32[64,32], index: 5, kind: input, shape index: {}]   ;;  %s2401_s6 = inlined_call_operand.vmem [shape: f32[1,32], index: 6, kind: input, shape index: {}]   ;;  %s2402_s7 = inlined_call_operand.vmem [shape: f32[32,1], index: 7, kind: input, shape index: {}]   ;;  %s2403_s8 = inlined_call_operand.hbm [shape: f32[2,64], index: 8, kind: output, shape index: {}]  }
   0x1   :  { %v39_v0 = vld [vmem:[%s2396_s1 + $0x38] sm:$0xff]  ;;  %v38_v1 = vld [vmem:[%s2396_s1 + $0x30] sm:$0xff]  ;;  %v37_v2 = vld [vmem:[%s2396_s1 + $0x28] sm:$0xff]  ;;  %123 = vmatprep.mubr.f32.mxu0 %v2072_v4  ;;  %1879 = vmatprep.subr.mxu1 %v2072_v4 }
   0x2   :  { %83 = vmatprep.subr.mxu0 %v39_v0  ;;  %v36_v3 = vld [vmem:[%s2396_s1 + $0x20] sm:$0xff]  ;;  %v35_v5 = vld [vmem:[%s2396_s1 + $0x18] sm:$0xff]  ;;  %v34_v6 = vld [vmem:[%s2396_s1 + $0x10] sm:$0xff] }
   0x3   :  { %84 = vmatpush1.msra.mxu0 %v38_v1 }
   0x4   :  { %85 = vmatprep.subr.mxu0 %v37_v2 }
   0x5   :  { %13 = vsyncpa [#allocation3], 0  ;;  %86 = vmatpush1.msra.mxu0 %v36_v3  ;;  %v33_v7 = vld [vmem:[%s2396_s1 + $0x8] sm:$0xff]  ;;  %v32_v8 = vld [vmem:[%s2396_s1] sm:$0xff]  ;;  %vm52_vm0 = vcmask 261120   ;;  %v42_v11 = vlaneseq  ;;  %vm2073_vm1 = vmmov 0  }
   0x6   :  { %87 = vmatprep.subr.mxu0 %v35_v5  ;;  %v30_v9 = vld [vmem:[%s2395_s0] sm:$0xff]  ;;  %v31_v10 = vld [vmem:[%s2395_s0 + $0x8] sm:$0xff]  ;;  %1881 = vmatprep.mubr.msk.f32.mxu1 %vm2073_vm1, %v2072_v4  ;;  %s2074_s0 = smov 64   ;;  %vm139_vm2 = vcmask 130048   ;;  %vm291_vm3 = vcmask 64512   ;;  %s2076_s26 = smov 112  }
   0x7   :  { %88 = vmatpush1.msra.mxu0 %v34_v6  ;;  %v43_v12 = vshrl.u32 %v42_v11, 7  ;;  %v40_v14 = vld [vmem:[%s2397_s2] sm:$0x3]  ;;  %s2075_s2 = smov 48   ;;  %s2077_s27 = smov 32   ;;  %vm1480_vm4 = vcmask 392192  }
   0x8   :  { %89 = vmatprep.subr.mxu0 %v33_v7  ;;  %s2078_s28 = smov 96   ;;  %s2079_s29 = smov 16   ;;  %vm1483_vm5 = vcmask 523264   ;;  %vm1712_vm6 = vcmask 7168   ;;  %vm1779_vm7 = vcmask 1041409   ;;  %vm1782_vm8 = vcmask 517120  }
   0x9   :  { %90 = vmatpush1.msra.mxu0 %v32_v8  ;;  %v44_v13 = vsub.s32 0, %v43_v12  ;;  %v48_v15 = vsub.s32 1, %v43_v12  ;;  %s2080_s30 = smov 80  }
   0xa   :  { %1798 = vmatmul.mubr.msk.f32.vlgmr.msra.gmra.mxu0 %vm52_vm0, %v30_v9  ;;  %1894 = vmatprep.subr.mxu0 %v2072_v4 }
   0xb   :  { %129 = vmatprep.mubr.f32.mxu0 %v2072_v4  ;;  %v45_v16 = vrot.slane %v40_v14, %v44_v13  ;;  %v49_v17 = vrot.slane %v40_v14, %v48_v15 }
   0xe   :  { %1799 = vmatmul.mubr.msk.f32.gmra.mxu0 %vm52_vm0, %v31_v10 }
   0xf   :  { %1896 = vmatprep.mubr.msk.f32.mxu0 %vm2073_vm1, %v2072_v4 }
  0xca   :  { %v125_v18 = vpop.f32.mrf.mxu0 }
  0xcb   :  { %v2171_v19 = vadd.f32 %v125_v18, %v45_v16 }
  0xcc   :  { %v127_v20 = vpop.f32.mrf.mxu0 }
  0xcd   :  { %v2173_v21 = vadd.f32 %v127_v20, %v49_v17  ;;  %137 = vrot.lane.b32.xlu0 %v2171_v19, %s2074_s0 }
  0xce   :  { %v131_v22 = vpop.f32.mrf.mxu0 }
  0xcf   :  { %v2176_v23 = vadd.f32 %v131_v22, %v45_v16 }
  0xd0   :  { %v133_v24 = vpop.f32.mrf.mxu0 }
  0xd1   :  { %v2178_v25 = vadd.f32 %v133_v24, %v49_v17  ;;  %215 = vrot.lane.b32.xlu0 %v2176_v23, %s2074_s0 }
  0xd3   :  { %1895 = vmatpush3.msra.mxu0 %v2178_v25 }
  0xd4   :  { %1904 = vmatprep.subr.mxu0 %v2072_v4 }
 0x13f   :  { %v138_v26 = vpop.permute.xlu0 %137 }
 0x140   :  { %1880 = vmatpush3.xpose.msk.msra.mxu1 %vm139_vm2, %v138_v26 }
 0x141   :  { %1884 = vmatprep.subr.mxu1 %v2072_v4 }
 0x143   :  { %1882 = vmatmul.mubr.msk.f32.vlgmr.msra.gmra.mxu1 %vm139_vm2, %v2171_v19  ;;  %v216_v27 = vpop.permute.xlu0 %215 }
 0x144   :  { %1885 = vmatpush3.xpose.msk.msra.mxu1 %vm139_vm2, %v216_v27  ;;  %1886 = vmatprep.mubr.msk.f32.mxu1 %vm2073_vm1, %v2072_v4 }
 0x145   :  { %1889 = vmatprep.subr.mxu1 %v2072_v4 }
 0x147   :  { %1887 = vmatmul.mubr.msk.f32.vlgmr.msra.gmra.mxu1 %vm139_vm2, %v2176_v23 }
 0x148   :  { %1890 = vmatpush3.msra.mxu1 %v2173_v21  ;;  %1891 = vmatprep.mubr.msk.f32.mxu1 %vm2073_vm1, %v2072_v4 }
 0x149   :  { %1899 = vmatprep.subr.mxu1 %v2072_v4 }
 0x203   :  { %v210_v28 = vpop.f32.mrf.mxu1 }
 0x204   :  { %v292_v29 = vsel %vm291_vm3, %v210_v28, -inf }
 0x205   :  { %293 = vmax.xlane.f32.xlu1 %v292_v29  ;;  %v1883_v30 = vpop.f32.mrf.mxu1 }
 0x207   :  { %v287_v31 = vpop.f32.mrf.mxu1 }
 0x208   :  { %v295_v32 = vsel %vm291_vm3, %v287_v31, -inf }
 0x209   :  { %296 = vmax.xlane.f32.xlu1 %v295_v32  ;;  %v1888_v33 = vpop.f32.mrf.mxu1 }
 0x21a   :  { %462 = vrot.lane.b32.xlu1 %v2171_v19, %s2075_s2 }
 0x21e   :  { %540 = vrot.lane.b32.xlu1 %v2176_v23, %s2075_s2 }
 0x222   :  { %460 = vrot.lane.b32.xlu1 %v2171_v19, %s2076_s26 }
 0x28e   :  { %v294_v34 = vpop.xlane.xlu1 %293 }
 0x28f   :  { %v298_v35 = vsub.f32 %v210_v28, %v294_v34 }
 0x291   :  { %v300_v36 = vmul.f32 1.442695, %v298_v35 }
 0x292   :  { %v297_v37 = vpop.xlane.xlu1 %296 }
 0x293   :  { %2002 = vpow2.f32 %v300_v36  ;;  %v299_v38 = vsub.f32 %v287_v31, %v297_v37 }
 0x295   :  { %v302_v39 = vmul.f32 1.442695, %v299_v38 }
 0x296   :  { %v463_v44 = vpop.permute.xlu1 %462 }
 0x297   :  { %2004 = vpow2.f32 %v302_v39 }
 0x29a   :  { %v541_v45 = vpop.permute.xlu1 %540 }
 0x29e   :  { %v461_v46 = vpop.permute.xlu1 %460 }
 0x2a0   :  { %v2003_v40 = vpop.eup %2002 }
 0x2a1   :  { %v304_v41 = vsel %vm291_vm3, %v2003_v40, 0.0 }
 0x2a2   :  { %305 = vadd.xlane.f32.xlu0 %v304_v41 }
 0x2a4   :  { %v2005_v42 = vpop.eup %2004 }
 0x2a5   :  { %v307_v43 = vsel %vm291_vm3, %v2005_v42, 0.0 }
 0x2a6   :  { %308 = vadd.xlane.f32.xlu1 %v307_v43 }
 0x2b7   :  { %538 = vrot.lane.b32.xlu1 %v2176_v23, %s2076_s26 }
 0x32b   :  { %v306_v47 = vpop.xlane.xlu0 %305 }
 0x32c   :  { %2006 = vrcp.f32 %v306_v47 }
 0x32f   :  { %v309_v48 = vpop.xlane.xlu1 %308 }
 0x330   :  { %2008 = vrcp.f32 %v309_v48 }
 0x333   :  { %v539_v53 = vpop.permute.xlu1 %538 }
 0x339   :  { %v2007_v49 = vpop.eup %2006 }
 0x33a   :  { %v311_v50 = vmul.f32 %v2007_v49, %v2003_v40 }
 0x33c   :  { %1892 = vmatmul.mubr.msk.f32.vlgmr.msra.gmra.mxu1 %vm291_vm3, %v311_v50 }
 0x33d   :  { %v2009_v51 = vpop.eup %2008  ;;  %1900 = vmatpush3.xpose.msk.msra.mxu1 %vm139_vm2, %v463_v44  ;;  %1901 = vmatprep.mubr.msk.f32.mxu1 %vm2073_vm1, %v2072_v4 }
 0x33e   :  { %v313_v52 = vmul.f32 %v2009_v51, %v2005_v42  ;;  %1909 = vmatprep.subr.mxu1 %v2072_v4 }
 0x340   :  { %1897 = vmatmul.mubr.msk.f32.vlgmr.msra.gmra.mxu0 %vm291_vm3, %v313_v52  ;;  %1902 = vmatmul.mubr.msk.f32.vlgmr.msra.gmra.mxu1 %vm139_vm2, %v461_v46 }
 0x341   :  { %1905 = vmatpush3.xpose.msk.msra.mxu0 %vm139_vm2, %v541_v45  ;;  %1906 = vmatprep.mubr.msk.f32.mxu0 %vm2073_vm1, %v2072_v4 }
 0x342   :  { %1914 = vmatprep.subr.mxu0 %v2072_v4  ;;  %1911 = vmatprep.mubr.msk.f32.mxu1 %vm2073_vm1, %v2072_v4 }
 0x344   :  { %1907 = vmatmul.mubr.msk.f32.vlgmr.msra.gmra.mxu0 %vm139_vm2, %v539_v53 }
 0x345   :  { %1916 = vmatprep.mubr.msk.f32.mxu0 %vm2073_vm1, %v2072_v4 }
 0x3fc   :  { %v2225_v54 = vpop.f32.mrf.mxu1 }
 0x3fe   :  { %v1893_v55 = vpop.f32.mrf.mxu1 }
 0x400   :  { %v2227_v56 = vpop.f32.mrf.mxu0  ;;  %v534_v57 = vpop.f32.mrf.mxu1 }
 0x401   :  { %v616_v58 = vsel %vm291_vm3, %v534_v57, -inf }
 0x402   :  { %v1898_v59 = vpop.f32.mrf.mxu0  ;;  %617 = vmax.xlane.f32.xlu0 %v616_v58  ;;  %v1903_v60 = vpop.f32.mrf.mxu1 }
 0x404   :  { %v612_v61 = vpop.f32.mrf.mxu0 }
 0x405   :  { %v619_v62 = vsel %vm291_vm3, %v612_v61, -inf }
 0x406   :  { %620 = vmax.xlane.f32.xlu1 %v619_v62  ;;  %v1908_v63 = vpop.f32.mrf.mxu0 }
 0x417   :  { %872 = vrot.lane.b32.xlu1 %v2176_v23, %s2077_s27 }
 0x418   :  { %639 = vrot.lane.b32.xlu0 %v2173_v21, %s2076_s26 }
 0x41c   :  { %716 = vrot.lane.b32.xlu0 %v2178_v25, %s2076_s26 }
 0x420   :  { %794 = vrot.lane.b32.xlu0 %v2171_v19, %s2077_s27 }
 0x48b   :  { %v618_v0 = vpop.xlane.xlu0 %617 }
 0x48c   :  { %v622_v1 = vsub.f32 %v534_v57, %v618_v0 }
 0x48e   :  { %v624_v2 = vmul.f32 1.442695, %v622_v1 }
 0x48f   :  { %v621_v3 = vpop.xlane.xlu1 %620  ;;  %v640_v5 = vpop.permute.xlu0 %639 }
 0x490   :  { %2010 = vpow2.f32 %v624_v2  ;;  %v623_v6 = vsub.f32 %v612_v61, %v621_v3  ;;  %1910 = vmatpush3.msra.mxu1 %v640_v5 }
 0x491   :  { %1919 = vmatprep.subr.mxu1 %v2072_v4 }
 0x492   :  { %v626_v7 = vmul.f32 1.442695, %v623_v6 }
 0x493   :  { %v717_v8 = vpop.permute.xlu0 %716  ;;  %v873_v24 = vpop.permute.xlu1 %872 }
 0x494   :  { %2012 = vpow2.f32 %v626_v7  ;;  %1915 = vmatpush3.msra.mxu0 %v717_v8 }
 0x495   :  { %1924 = vmatprep.subr.mxu0 %v2072_v4 }
 0x497   :  { %v795_v13 = vpop.permute.xlu0 %794 }
 0x49d   :  { %v2011_v9 = vpop.eup %2010 }
 0x49e   :  { %v628_v10 = vsel %vm291_vm3, %v2011_v9, 0.0 }
 0x49f   :  { %629 = vadd.xlane.f32.xlu0 %v628_v10 }
 0x4a1   :  { %v2013_v11 = vpop.eup %2012 }
 0x4a2   :  { %v631_v12 = vsel %vm291_vm3, %v2013_v11, 0.0 }
 0x4a3   :  { %632 = vadd.xlane.f32.xlu0 %v631_v12 }
 0x4b9   :  { %792 = vrot.lane.b32.xlu0 %v2171_v19, %s2078_s28 }
 0x4bd   :  { %870 = vrot.lane.b32.xlu0 %v2176_v23, %s2078_s28 }
 0x528   :  { %v630_v14 = vpop.xlane.xlu0 %629 }
 0x529   :  { %2014 = vrcp.f32 %v630_v14 }
 0x52c   :  { %v633_v15 = vpop.xlane.xlu0 %632 }
 0x52d   :  { %2016 = vrcp.f32 %v633_v15 }
 0x530   :  { %v793_v20 = vpop.permute.xlu0 %792 }
 0x534   :  { %v871_v26 = vpop.permute.xlu0 %870 }
 0x536   :  { %v2015_v16 = vpop.eup %2014 }
 0x537   :  { %v635_v17 = vmul.f32 %v2015_v16, %v2011_v9 }
 0x539   :  { %1912 = vmatmul.mubr.msk.f32.vlgmr.msra.gmra.mxu1 %vm291_vm3, %v635_v17 }
 0x53a   :  { %v2017_v18 = vpop.eup %2016  ;;  %1920 = vmatpush3.xpose.msk.msra.mxu1 %vm139_vm2, %v795_v13  ;;  %1921 = vmatprep.mubr.msk.f32.mxu1 %vm2073_vm1, %v2072_v4 }
 0x53b   :  { %v637_v22 = vmul.f32 %v2017_v18, %v2013_v11  ;;  %1929 = vmatprep.subr.mxu1 %v2072_v4 }
 0x53d   :  { %1917 = vmatmul.mubr.msk.f32.vlgmr.msra.gmra.mxu0 %vm291_vm3, %v637_v22  ;;  %1922 = vmatmul.mubr.msk.f32.vlgmr.msra.gmra.mxu1 %vm139_vm2, %v793_v20 }
 0x53e   :  { %1925 = vmatpush3.xpose.msk.msra.mxu0 %vm139_vm2, %v873_v24  ;;  %1926 = vmatprep.mubr.msk.f32.mxu0 %vm2073_vm1, %v2072_v4 }
 0x53f   :  { %1934 = vmatprep.subr.mxu0 %v2072_v4  ;;  %1931 = vmatprep.mubr.msk.f32.mxu1 %vm2073_vm1, %v2072_v4 }
 0x541   :  { %1927 = vmatmul.mubr.msk.f32.vlgmr.msra.gmra.mxu0 %vm139_vm2, %v871_v26 }
 0x542   :  { %1936 = vmatprep.mubr.msk.f32.mxu0 %vm2073_vm1, %v2072_v4 }
 0x5f9   :  { %v2263_v27 = vpop.f32.mrf.mxu1 }
 0x5fb   :  { %v1913_v28 = vpop.f32.mrf.mxu1 }
 0x5fd   :  { %v2265_v29 = vpop.f32.mrf.mxu0  ;;  %v866_v30 = vpop.f32.mrf.mxu1 }
 0x5fe   :  { %v948_v31 = vsel %vm291_vm3, %v866_v30, -inf }
 0x5ff   :  { %v1918_v32 = vpop.f32.mrf.mxu0  ;;  %949 = vmax.xlane.f32.xlu0 %v948_v31  ;;  %v1923_v33 = vpop.f32.mrf.mxu1 }
 0x601   :  { %v944_v34 = vpop.f32.mrf.mxu0 }
 0x602   :  { %v951_v35 = vsel %vm291_vm3, %v944_v34, -inf }
 0x603   :  { %952 = vmax.xlane.f32.xlu1 %v951_v35  ;;  %v1928_v36 = vpop.f32.mrf.mxu0 }
 0x614   :  { %1046 = vrot.lane.b32.xlu1 %v2178_v25, %s2078_s28 }
 0x615   :  { %970 = vrot.lane.b32.xlu0 %v2173_v21, %s2078_s28 }
 0x618   :  { %1124 = vrot.lane.b32.xlu1 %v2171_v19, %s2079_s29 }
 0x61c   :  { %1122 = vrot.lane.b32.xlu1 %v2171_v19, %s2080_s30 }
 0x688   :  { %v950_v37 = vpop.xlane.xlu0 %949 }
 0x689   :  { %v954_v38 = vsub.f32 %v866_v30, %v950_v37 }
 0x68b   :  { %v956_v39 = vmul.f32 1.442695, %v954_v38 }
 0x68c   :  { %v953_v40 = vpop.xlane.xlu1 %952  ;;  %v971_v41 = vpop.permute.xlu0 %970 }
 0x68d   :  { %2018 = vpow2.f32 %v956_v39  ;;  %v955_v42 = vsub.f32 %v944_v34, %v953_v40  ;;  %1930 = vmatpush3.msra.mxu1 %v971_v41 }
 0x68e   :  { %1939 = vmatprep.subr.mxu1 %v2072_v4 }
 0x68f   :  { %v958_v43 = vmul.f32 1.442695, %v955_v42 }
 0x690   :  { %v1047_v44 = vpop.permute.xlu1 %1046 }
 0x691   :  { %2020 = vpow2.f32 %v958_v43  ;;  %1935 = vmatpush3.msra.mxu0 %v1047_v44 }
 0x692   :  { %1944 = vmatprep.subr.mxu0 %v2072_v4 }
 0x694   :  { %v1125_v51 = vpop.permute.xlu1 %1124 }
 0x69a   :  { %v2019_v45 = vpop.eup %2018 }
 0x69b   :  { %v960_v46 = vsel %vm291_vm3, %v2019_v45, 0.0 }
 0x69c   :  { %961 = vadd.xlane.f32.xlu0 %v960_v46 }
 0x69e   :  { %v2021_v19 = vpop.eup %2020 }
 0x69f   :  { %v963_v47 = vsel %vm291_vm3, %v2021_v19, 0.0 }
 0x6a0   :  { %964 = vadd.xlane.f32.xlu0 %v963_v47 }
 0x6b6   :  { %1202 = vrot.lane.b32.xlu0 %v2176_v23, %s2079_s29 }
 0x6ba   :  { %1200 = vrot.lane.b32.xlu0 %v2176_v23, %s2080_s30  ;;  %v1123_v23 = vpop.permute.xlu1 %1122 }
 0x725   :  { %v962_v48 = vpop.xlane.xlu0 %961 }
 0x726   :  { %2022 = vrcp.f32 %v962_v48 }
 0x729   :  { %v965_v49 = vpop.xlane.xlu0 %964 }
 0x72a   :  { %2024 = vrcp.f32 %v965_v49 }
 0x72d   :  { %v1203_v55 = vpop.permute.xlu0 %1202 }
 0x731   :  { %v1201_v58 = vpop.permute.xlu0 %1200 }
 0x733   :  { %v2023_v50 = vpop.eup %2022 }
 0x734   :  { %v967_v52 = vmul.f32 %v2023_v50, %v2019_v45  ;;  %v1536_v50 = vld [vmem:[%s2400_s5 + $0x38] sm:$0xff] }
 0x736   :  { %1932 = vmatmul.mubr.msk.f32.vlgmr.msra.gmra.mxu1 %vm291_vm3, %v967_v52  ;;  %v1534_v52 = vld [vmem:[%s2400_s5 + $0x28] sm:$0xff] }
 0x737   :  { %v2025_v53 = vpop.eup %2024  ;;  %1940 = vmatpush3.xpose.msk.msra.mxu1 %vm139_vm2, %v1125_v51  ;;  %1941 = vmatprep.mubr.msk.f32.mxu1 %vm2073_vm1, %v2072_v4  ;;  %v1535_v51 = vld [vmem:[%s2400_s5 + $0x30] sm:$0xff] }
 0x738   :  { %v969_v57 = vmul.f32 %v2025_v53, %v2021_v19  ;;  %1949 = vmatprep.subr.mxu1 %v2072_v4  ;;  %v1533_v53 = vld [vmem:[%s2400_s5 + $0x20] sm:$0xff] }
 0x73a   :  { %1937 = vmatmul.mubr.msk.f32.vlgmr.msra.gmra.mxu0 %vm291_vm3, %v969_v57  ;;  %1942 = vmatmul.mubr.msk.f32.vlgmr.msra.gmra.mxu1 %vm139_vm2, %v1123_v23  ;;  %v1531_v57 = vld [vmem:[%s2400_s5 + $0x10] sm:$0xff]  ;;  %v1530_v23 = vld [vmem:[%s2400_s5 + $0x8] sm:$0xff] }
 0x73b   :  { %1945 = vmatpush3.xpose.msk.msra.mxu0 %vm139_vm2, %v1203_v55  ;;  %1946 = vmatprep.mubr.msk.f32.mxu0 %vm2073_vm1, %v2072_v4  ;;  %v1532_v55 = vld [vmem:[%s2400_s5 + $0x18] sm:$0xff] }
 0x73c   :  { %1954 = vmatprep.subr.mxu0 %v2072_v4  ;;  %1951 = vmatprep.mubr.msk.f32.mxu1 %vm2073_vm1, %v2072_v4 }
 0x73e   :  { %1947 = vmatmul.mubr.msk.f32.vlgmr.msra.gmra.mxu0 %vm139_vm2, %v1201_v58  ;;  %v1529_v58 = vld [vmem:[%s2400_s5] sm:$0xff] }
 0x73f   :  { %1956 = vmatprep.mubr.msk.f32.mxu0 %vm2073_vm1, %v2072_v4 }
 0x7f6   :  { %v1042_v59 = vpop.f32.mrf.mxu1 }
 0x7f8   :  { %v1933_v60 = vpop.f32.mrf.mxu1 }
 0x7fa   :  { %v1118_v61 = vpop.f32.mrf.mxu0  ;;  %v1196_v62 = vpop.f32.mrf.mxu1 }
 0x7fb   :  { %v1278_v63 = vsel %vm291_vm3, %v1196_v62, -inf }
 0x7fc   :  { %v1938_v0 = vpop.f32.mrf.mxu0  ;;  %1279 = vmax.xlane.f32.xlu1 %v1278_v63  ;;  %v1943_v1 = vpop.f32.mrf.mxu1 }
 0x7fe   :  { %v1274_v2 = vpop.f32.mrf.mxu0 }
 0x7ff   :  { %v1281_v3 = vsel %vm291_vm3, %v1274_v2, -inf }
 0x800   :  { %1282 = vmax.xlane.f32.xlu0 %v1281_v3  ;;  %v1948_v5 = vpop.f32.mrf.mxu0 }
 0x801   :  { %v1825_v5 = vld [vmem:[%s2399_s4] ss:$0 sm:$0xff] }
 0x885   :  { %v1280_v6 = vpop.xlane.xlu1 %1279 }
 0x886   :  { %v1284_v7 = vsub.f32 %v1196_v62, %v1280_v6 }
 0x888   :  { %v1286_v8 = vmul.f32 1.442695, %v1284_v7 }
 0x889   :  { %v1283_v9 = vpop.xlane.xlu0 %1282 }
 0x88a   :  { %2026 = vpow2.f32 %v1286_v8  ;;  %v1285_v4 = vsub.f32 %v1274_v2, %v1283_v9  ;;  %v1824_v2 = vld [vmem:[%s2398_s3] ss:$0 sm:$0xff] }
 0x88c   :  { %v1288_v10 = vmul.f32 1.442695, %v1285_v4 }
 0x88e   :  { %2028 = vpow2.f32 %v1288_v10 }
 0x897   :  { %v2027_v11 = vpop.eup %2026 }
 0x898   :  { %v1290_v12 = vsel %vm291_vm3, %v2027_v11, 0.0 }
 0x899   :  { %1291 = vadd.xlane.f32.xlu0 %v1290_v12  ;;  %v1629_v12 = vld [vmem:[%s2402_s7 + $0x10] sm:$0xff] }
 0x89b   :  { %v2029_v13 = vpop.eup %2028 }
 0x89c   :  { %v1293_v14 = vsel %vm291_vm3, %v2029_v13, 0.0 }
 0x89d   :  { %1294 = vadd.xlane.f32.xlu1 %v1293_v14  ;;  %v1627_v14 = vld [vmem:[%s2402_s7] sm:$0xff] }
 0x8ae   :  { %1376 = vrot.lane.b32.xlu1 %v2178_v25, %s2080_s30 }
 0x8af   :  { %1300 = vrot.lane.b32.xlu0 %v2173_v21, %s2080_s30 }
 0x8b2   :  { %1454 = vrot.lane.b32.xlu1 %v2263_v27, %s2079_s29 }
 0x8b3   :  { %1456 = vrot.lane.b32.xlu0 %v2265_v29, %s2079_s29 }
 0x8b6   :  { %1462 = vrot.lane.b32.xlu1 %v1042_v59, %s2077_s27 }
 0x8b7   :  { %1464 = vrot.lane.b32.xlu0 %v1118_v61, %s2077_s27 }
 0x922   :  { %v1292_v15 = vpop.xlane.xlu0 %1291 }
 0x923   :  { %2030 = vrcp.f32 %v1292_v15  ;;  %v1826_v15 = vld [vmem:[%s2401_s6] ss:$0 sm:$0xff]  ;;  %s2082_s6 = smov [#allocation2]  }
 0x926   :  { %v1301_v16 = vpop.permute.xlu0 %1300  ;;  %v1295_v17 = vpop.xlane.xlu1 %1294 }
 0x927   :  { %2032 = vrcp.f32 %v1295_v17  ;;  %1950 = vmatpush3.msra.mxu1 %v1301_v16 }
 0x928   :  { %1959 = vmatprep.subr.mxu1 %v1536_v50 }
 0x92a   :  { %v1377_v25 = vpop.permute.xlu1 %1376  ;;  %v1457_v30 = vpop.permute.xlu0 %1456 }
 0x92b   :  { %1955 = vmatpush3.msra.mxu0 %v1377_v25  ;;  %v1477_v38 = vsel %vm139_vm2, %v2227_v56, %v1457_v30 }
 0x92e   :  { %v1455_v29 = vpop.permute.xlu1 %1454  ;;  %v1465_v33 = vpop.permute.xlu0 %1464 }
 0x92f   :  { %v1476_v32 = vsel %vm139_vm2, %v2225_v54, %v1455_v29  ;;  %v1479_v39 = vsel %vm52_vm0, %v1477_v38, %v1465_v33 }
 0x930   :  { %v2031_v18 = vpop.eup %2030 }
 0x931   :  { %v1297_v21 = vmul.f32 %v2031_v18, %v2027_v11  ;;  %v1630_v11 = vld [vmem:[%s2402_s7 + $0x18] sm:$0xff] }
 0x932   :  { %v1463_v31 = vpop.permute.xlu1 %1462  ;;  %1978 = vmatprep.subr.mxu0 %v1630_v11 }
 0x933   :  { %1952 = vmatmul.mubr.msk.f32.vlgmr.msra.gmra.mxu1 %vm291_vm3, %v1297_v21  ;;  %v1478_v34 = vsel %vm52_vm0, %v1476_v32, %v1463_v31 }
 0x934   :  { %v2033_v20 = vpop.eup %2032  ;;  %1960 = vmatpush3.msra.mxu1 %v1536_v50 }
 0x935   :  { %v1299_v22 = vmul.f32 %v2033_v20, %v2029_v13  ;;  %1961 = vmatprep.subr.mxu1 %v1535_v51  ;;  %v1628_v13 = vld [vmem:[%s2402_s7 + $0x8] sm:$0xff]  ;;  %s1790_s7 = sshll.u32 %s2082_s6, 4  ;;  %s1791_s7 = int_to_ptr.vmem [resolvable:$true] %s1790_s7 }
 0x936   :  { %1962 = vmatpush3.msra.mxu1 %v1535_v51  ;;  %s2050_s11 = scalar_lea.vmem %s1791_s7, 32  ;;  %p2055_p1 = scmp.lt.s32.totalorder %s1791_s7, %s1791_s7 }
 0x937   :  { %1957 = vmatmul.mubr.msk.f32.vlgmr.msra.gmra.mxu0 %vm291_vm3, %v1299_v22  ;;  %1963 = vmatprep.subr.mxu1 %v1534_v52  ;;  %v2081_v22 = vmov 0   ;;  %p2051_p0 = scmp.ne.s32.totalorder %s1791_s7, %s2050_s11  ;;  %p2056_p2 = scmp.lt.s32.totalorder %s2050_s11, %s2050_s11 }
 0x938   :  { %1964 = vmatpush3.msra.mxu1 %v1534_v52  ;;  %1979 = vmatpush3.msra.mxu0 %v1630_v11 }
 0x939   :  { %1965 = vmatprep.subr.mxu1 %v1533_v53  ;;  %1980 = vmatprep.subr.mxu0 %v1629_v12  ;;  %p2057_p3 = por %p2056_p2, %p2055_p1 }
 0x93a   :  { %1966 = vmatpush3.msra.mxu1 %v1533_v53  ;;  %1981 = vmatpush3.msra.mxu0 %v1629_v12 }
 0x93b   :  { %1967 = vmatprep.subr.mxu1 %v1532_v55  ;;  %1982 = vmatprep.subr.mxu0 %v1628_v13  ;;  %p2058_p4 = pnand %p2057_p3, %p2051_p0 }
 0x93c   :  { %1968 = vmatpush3.msra.mxu1 %v1532_v55  ;;  %1983 = vmatpush3.msra.mxu0 %v1628_v13 }
 0x93d   :  { %1969 = vmatprep.subr.mxu1 %v1531_v57  ;;  %1984 = vmatprep.subr.mxu0 %v1627_v14 }
 0x93e   :  { %1970 = vmatpush3.msra.mxu1 %v1531_v57  ;;  %1985 = vmatpush3.msra.mxu0 %v1627_v14 }
 0x93f   :  { %1971 = vmatprep.subr.mxu1 %v1530_v23  ;;  %2001 = vset.pattern.permute.xlu1 %v2081_v22 }
 0x940   :  { %1972 = vmatpush3.msra.mxu1 %v1530_v23  ;;  %2000 = vset.pattern.permute.xlu0 %v2081_v22 }
 0x941   :  { %1973 = vmatprep.subr.mxu1 %v1529_v58 }
 0x942   :  { %1974 = vmatpush3.msra.mxu1 %v1529_v58 }
 0x9f3   :  { %v1372_v24 = vpop.f32.mrf.mxu1 }
 0x9f4   :  { %1470 = vrot.lane.b32.xlu1 %v1372_v24, %s2075_s2 }
 0x9f5   :  { %v1953_v26 = vpop.f32.mrf.mxu1 }
 0x9f7   :  { %v1448_v27 = vpop.f32.mrf.mxu0 }
 0x9f8   :  { %1472 = vrot.lane.b32.xlu0 %v1448_v27, %s2075_s2 }
 0x9f9   :  { %v1958_v28 = vpop.f32.mrf.mxu0 }
 0xa66   :  { %v1471_v35 = vpop.permute.xlu1 %1470 }
 0xa67   :  { %v1481_v36 = vsel %vm1480_vm4, %v1478_v34, %v1471_v35 }
 0xa68   :  { %v1484_v37 = vsel %vm1483_vm5, %v1481_v36, 0.0 }
 0xa69   :  { %1485 = vadd.xlane.f32.xlu1 %v1484_v37 }
 0xa6a   :  { %v1473_v40 = vpop.permute.xlu0 %1472 }
 0xa6b   :  { %v1482_v41 = vsel %vm1480_vm4, %v1479_v39, %v1473_v40 }
 0xa6c   :  { %v1487_v42 = vsel %vm1483_vm5, %v1482_v41, 0.0 }
 0xa6d   :  { %1488 = vadd.xlane.f32.xlu0 %v1487_v42 }
 0xaf2   :  { %v1486_v54 = vpop.xlane.xlu1 %1485 }
 0xaf3   :  { %v1491_v43 = vmul.f32 0.015625, %v1486_v54 }
 0xaf5   :  { %v1493_v44 = vsub.f32 %v1481_v36, %v1491_v43 }
 0xaf6   :  { %v1489_v45 = vpop.xlane.xlu0 %1488 }
 0xaf7   :  { %v1492_v46 = vmul.f32 0.015625, %v1489_v45  ;;  %v1495_v19 = vmul.f32 %v1493_v44, %v1493_v44 }
 0xaf9   :  { %v1494_v47 = vsub.f32 %v1482_v41, %v1492_v46  ;;  %v1497_v48 = vsel %vm1483_vm5, %v1495_v19, 0.0 }
 0xafa   :  { %1498 = vadd.xlane.f32.xlu0 %v1497_v48 }
 0xafb   :  { %v1496_v49 = vmul.f32 %v1494_v47, %v1494_v47 }
 0xafd   :  { %v1500_v56 = vsel %vm1483_vm5, %v1496_v49, 0.0 }
 0xafe   :  { %1501 = vadd.xlane.f32.xlu1 %v1500_v56 }
 0xb83   :  { %v1499_v59 = vpop.xlane.xlu0 %1498 }
 0xb84   :  { %v1503_v60 = vmul.f32 0.015625, %v1499_v59 }
 0xb86   :  { %v1505_v61 = vadd.f32 1e-05, %v1503_v60 }
 0xb87   :  { %v1502_v62 = vpop.xlane.xlu1 %1501 }
 0xb88   :  { %2034 = vrsqrt.f32 %v1505_v61  ;;  %v1504_v63 = vmul.f32 0.015625, %v1502_v62 }
 0xb8a   :  { %v1506_v0 = vadd.f32 1e-05, %v1504_v63 }
 0xb8c   :  { %2036 = vrsqrt.f32 %v1506_v0 }
 0xb95   :  { %v2035_v1 = vpop.eup %2034 }
 0xb96   :  { %v1509_v3 = vmul.f32 %v2035_v1, %v1493_v44 }
 0xb98   :  { %v1518_v6 = vmul.f32 %v1824_v2, %v1509_v3 }
 0xb99   :  { %v2037_v7 = vpop.eup %2036 }
 0xb9a   :  { %v1510_v8 = vmul.f32 %v2037_v7, %v1494_v47  ;;  %v2359_v9 = vadd.f32 %v1825_v5, %v1518_v6 }
 0xb9c   :  { %v1519_v4 = vmul.f32 %v1824_v2, %v1510_v8  ;;  %1975 = vmatprep.mubr.msk.f32.mxu1 %vm1483_vm5, %v2359_v9 }
 0xb9e   :  { %v2363_v10 = vadd.f32 %v1825_v5, %v1519_v4 }
 0xba0   :  { %1976 = vmatmul.mubr.msk.f32.vlgmr.msra.gmra.mxu1 %vm1483_vm5, %v2363_v10 }
 0xc60   :  { %v1977_v16 = vpop.f32.mrf.mxu1 }
 0xc61   :  { %v1622_v17 = vadd.f32 %v1977_v16, %v1826_v15 }
 0xc62   :  { %v1616_v25 = vpop.f32.mrf.mxu1 }
 0xc63   :  { %v1617_v18 = vadd.f32 %v1826_v15, %v1616_v25 }
 0xc65   :  { %2038 = vtanh.f32 %v1617_v18 }
 0xc66   :  { %2040 = vtanh.f32 %v1622_v17 }
 0xc72   :  { %v2039_v21 = vpop.eup %2038 }
 0xc73   :  { %v2041_v20 = vpop.eup %2040  ;;  %1986 = vmatprep.mubr.msk.f32.mxu0 %vm52_vm0, %v2039_v21 }
 0xc74   :  { %1987 = vmatmul.mubr.msk.f32.vlgmr.msra.gmra.mxu0 %vm52_vm0, %v2041_v20 }
 0xd34   :  { %v1988_v24 = vpop.f32.mrf.mxu0 }
 0xd35   :  { %v1720_v26 = vsel %vm1712_vm6, %v1988_v24, -inf }
 0xd36   :  { %v1721_v27 = vrot.slane %v1720_v26, 4  ;;  %v1703_v28 = vpop.f32.mrf.mxu0 }
 0xd37   :  { %v1713_v29 = vsel %vm1712_vm6, %v1703_v28, -inf }
 0xd38   :  { %v1722_v30 = vmax.f32 %v1720_v26, %v1721_v27  ;;  %v1714_v31 = vrot.slane %v1713_v29, 4 }
 0xd3a   :  { %v1723_v32 = vrot.slane %v1722_v30, 2  ;;  %v1715_v33 = vmax.f32 %v1713_v29, %v1714_v31 }
 0xd3c   :  { %v1724_v34 = vmax.f32 %v1722_v30, %v1723_v32  ;;  %v1716_v35 = vrot.slane %v1715_v33, 2 }
 0xd3e   :  { %v1725_v36 = vrot.slane %v1724_v34, 1  ;;  %v1717_v37 = vmax.f32 %v1715_v33, %v1716_v35 }
 0xd40   :  { %v1726_v38 = vmax.f32 %v1724_v34, %v1725_v36  ;;  %v1718_v39 = vrot.slane %v1717_v37, 1 }
 0xd42   :  { %v1728_v40 = vsub.f32 %v1988_v24, %v1726_v38  ;;  %v1719_v41 = vmax.f32 %v1717_v37, %v1718_v39 }
 0xd44   :  { %v1731_v42 = vmul.f32 1.442695, %v1728_v40  ;;  %v1727_v54 = vsub.f32 %v1703_v28, %v1719_v41 }
 0xd46   :  { %2042 = vpow2.f32 %v1731_v42  ;;  %v1729_v43 = vmul.f32 1.442695, %v1727_v54 }
 0xd48   :  { %2044 = vpow2.f32 %v1729_v43 }
 0xd53   :  { %v2043_v44 = vpop.eup %2042 }
 0xd54   :  { %v1740_v45 = vsel %vm1712_vm6, %v2043_v44, 0.0 }
 0xd55   :  { %v2045_v46 = vpop.eup %2044  ;;  %v1741_v19 = vrot.slane %v1740_v45, 4 }
 0xd56   :  { %v1733_v47 = vsel %vm1712_vm6, %v2045_v46, 0.0 }
 0xd57   :  { %v1742_v48 = vadd.f32 %v1741_v19, %v1740_v45  ;;  %v1734_v49 = vrot.slane %v1733_v47, 4 }
 0xd59   :  { %v1743_v56 = vrot.slane %v1742_v48, 2  ;;  %v1735_v50 = vadd.f32 %v1734_v49, %v1733_v47 }
 0xd5b   :  { %v1744_v51 = vadd.f32 %v1743_v56, %v1742_v48  ;;  %v1736_v52 = vrot.slane %v1735_v50, 2 }
 0xd5d   :  { %v1745_v53 = vrot.slane %v1744_v51, 1  ;;  %v1737_v55 = vadd.f32 %v1736_v52, %v1735_v50 }
 0xd5f   :  { %v1746_v57 = vadd.f32 %v1745_v53, %v1744_v51  ;;  %v1738_v23 = vrot.slane %v1737_v55, 1 }
 0xd61   :  { %2046 = vrcp.f32 %v1746_v57  ;;  %v1739_v58 = vadd.f32 %v1738_v23, %v1737_v55 }
 0xd63   :  { %2048 = vrcp.f32 %v1739_v58 }
 0xd6e   :  { %v2047_v59 = vpop.eup %2046 }
 0xd6f   :  { %v1750_v60 = vmul.f32 %v2047_v59, %v2043_v44 }
 0xd70   :  { %v2049_v61 = vpop.eup %2048 }
 0xd71   :  { %1758 = vperm.xlu1 %2001, %v1750_v60   ;;  %v1748_v62 = vmul.f32 %v2049_v61, %v2045_v46 }
 0xd73   :  { %1753 = vperm.xlu0 %2000, %v1748_v62  }
 0xdec   :  { %v1759_v63 = vpop.permute.xlu1 %1758 }
 0xded   :  { %v1762_v0 = vmul.f32 %v1759_v63, %v2363_v10 }
 0xdee   :  { %v1754_v1 = vpop.permute.xlu0 %1753 }
 0xdef   :  { %v1770_v2 = vsel %vm1483_vm5, %v1762_v0, 0.0  ;;  %v1761_v3 = vmul.f32 %v1754_v1, %v2359_v9 }
 0xdf0   :  { %v1771_v5 = vrot.slane %v1770_v2, 4 }
 0xdf1   :  { %v1763_v6 = vsel %vm1483_vm5, %v1761_v3, 0.0 }
 0xdf2   :  { %v1772_v7 = vadd.f32 %v1771_v5, %v1770_v2  ;;  %v1764_v8 = vrot.slane %v1763_v6, 4 }
 0xdf4   :  { %v1773_v4 = vrot.slane %v1772_v7, 2  ;;  %v1765_v11 = vadd.f32 %v1764_v8, %v1763_v6 }
 0xdf6   :  { %v1774_v12 = vadd.f32 %v1773_v4, %v1772_v7  ;;  %v1766_v13 = vrot.slane %v1765_v11, 2 }
 0xdf8   :  { %v1775_v14 = vrot.slane %v1774_v12, 1  ;;  %v1767_v15 = vadd.f32 %v1766_v13, %v1765_v11 }
 0xdfa   :  { %v1768_v16 = vrot.slane %v1767_v15, 1  ;;  %v1776_v17 = vadd.f32 %v1775_v14, %v1774_v12 }
 0xdfc   :  { %v1769_v10 = vadd.f32 %v1768_v16, %v1767_v15 }
 0xdfe   :  { %v1780_v9 = vsel %vm1779_vm7, %v1776_v17, %v1769_v10 }
 0xdff   :  { %1783 = vst.msk [vmem:[#allocation2] sm:$0x3] %vm1782_vm8, %v1780_v9 }
 0xe00   :  { %2061 = shalt.err (!%p2058_p4)
}
 0xe01   :  { %1793 = dma.vmem_to_hbm [thread:$0]  %s1791_s7, 32, %s2403_s8, [#allocation3]  }
 0xe02   :  { %2070 = dma.done.wait [#allocation3], 32  }
 0xe03   :  { %2071 = vsyncadd [#allocation3], 4294967264 }
 0xe04   :  { %1797 = vsyncpa [#allocation3], 1 }

</bundles_post_ra>
